<compile_context>
chip_gen: v5e
topology: v5e:2x2
jax: 0.10.0
libtpu: 0.0.40
codegen_flags: <defaults>
</compile_context>

<pallas_src>
import functools

import jax
import jax.numpy as jnp
from jax import lax
from jax.experimental import pallas as pl
from jax.experimental.pallas import tpu as pltpu

# ---- small config consistent with the module's forward ----
VOCAB = 50
EMB = 16
HIDDEN = 32
NUM_LAYERS = 2
NUM_CLASSES = 4
BATCH = 2
SEQ = 8

BP = 8                                   # batch padded to one sublane tile
VP = ((VOCAB + 7) // 8) * 8              # vocab rows padded to a multiple of 8
NEG = -1e30                              # softmax mask value for padded logit lanes


def textrnn_kernel(L, Bp, T, H, Vp, C, ids_ref, p_ref, out_ref, a_scr, b_scr):
    """Whole forward pass. Activations are packed (T*Bp, 2H) slabs, t-major, 8-row blocks."""
    H2 = 2 * H
    TB = T * Bp

    # Lane masks (computed once): lanes [0, H) = forward direction half.
    lane_b = lax.broadcasted_iota(jnp.int32, (Bp, H2), 1) < H        # (Bp, 2H)
    lane_tb = lax.broadcasted_iota(jnp.int32, (TB, H2), 1) < H       # (TB, 2H)

    # Static row offsets inside the packed parameter slab (all multiples of 8).
    off_w0 = 0                             # (Vp, 2H)  emb @ [Wih_f^T|Wih_b^T] + bias0
    off_win = off_w0 + Vp                  # (L-1) x (2H, 2H) input projections, dirs fused
    off_whh = off_win + (L - 1) * H2       # L x (2H, 2H) blockdiag hidden-to-hidden
    off_bias = off_whh + L * H2            # 8 rows; row (l-1) = fused bias of layer l
    off_fcw = off_bias + 8                 # (2H, 2H) FC weight, cols >= C are zero
    off_fcb = off_fcw + H2                 # 8 rows; row 0 = [fc_b | NEG ...]

    # --- layer-0 pre-activations: one-hot matmul against the folded (emb x Wih + bias) table ---
    ids = ids_ref[...]                                               # (TB, 1) int32, t-major
    onehot = (lax.broadcasted_iota(jnp.int32, (TB, Vp), 1) == ids).astype(jnp.float32)
    pre = jnp.dot(onehot, p_ref[off_w0:off_w0 + Vp, :],
                  preferred_element_type=jnp.float32)                # (TB, 2H), biases folded

    head_in = None
    for layer in range(L):
        if layer > 0:
            # Time-ordered input slab [hf(t) | hb(t)] rebuilt with ONE full-slab select.
            slab = jnp.where(lane_tb, a_scr[...], b_scr[...])        # (TB, 2H)
            w_in = p_ref[off_win + (layer - 1) * H2: off_win + layer * H2, :]
            bias = p_ref[off_bias + (layer - 1): off_bias + layer, :]        # (1, 2H)
            pre = jnp.dot(slab, w_in, preferred_element_type=jnp.float32) + bias

        whh = p_ref[off_whh + layer * H2: off_whh + (layer + 1) * H2, :]     # blockdiag (2H,2H)
        last = layer == L - 1

        # Fused bidirectional recurrence: h = [hf(s) | hb(T-1-s)], one (Bp,2H)@(2H,2H) per step.
        h = jnp.zeros((Bp, H2), jnp.float32)
        h_first = None
        for s in range(T):
            sp = jnp.where(lane_b,
                           pre[s * Bp:(s + 1) * Bp, :],              # fwd half, time s
                           pre[(T - 1 - s) * Bp:(T - s) * Bp, :])    # bwd half, time T-1-s
            h = jnp.tanh(sp + jnp.dot(h, whh, preferred_element_type=jnp.float32))
            if last:
                if s == 0:
                    h_first = h                                      # holds hb(T-1) in lanes H:2H
            else:
                a_scr[s * Bp:(s + 1) * Bp, :] = h                    # step-ordered store
                b_scr[(T - 1 - s) * Bp:(T - s) * Bp, :] = h          # reverse-ordered store

        if last:
            # Head needs [hf(T-1) | hb(T-1)]; padded batch rows are ignored below.
            head_in = jnp.where(lane_b, h, h_first)                  # (Bp, 2H)

    # --- FC head + softmax (logits padded to 2H lanes; padded lanes carry -1e30 bias) ---
    fc_w = p_ref[off_fcw: off_fcw + H2, :]                           # (2H, 2H), cols >= C zero
    fc_b = p_ref[off_fcb: off_fcb + 1, :]                            # (1, 2H), lanes >= C = NEG
    logits = jnp.dot(head_in, fc_w, preferred_element_type=jnp.float32) + fc_b
    m = jnp.max(logits, axis=-1, keepdims=True)
    e = jnp.exp(logits - m)
    soft = e / jnp.sum(e, axis=-1, keepdims=True)
    out_ref[...] = soft[:out_ref.shape[0], :C]


def init_params(key):
    ks = jax.random.split(key, 4 + NUM_LAYERS * 2 * 4)
    it = iter(ks)
    params = {}
    params["embedding"] = jax.random.normal(next(it), (VOCAB, EMB), jnp.float32)

    k_rnn = 1.0 / jnp.sqrt(HIDDEN)
    rnn = []
    for layer in range(NUM_LAYERS):
        in_size = EMB if layer == 0 else 2 * HIDDEN
        dirs = []
        for _ in range(2):  # forward, backward
            dirs.append({
                "w_ih": jax.random.uniform(next(it), (HIDDEN, in_size), jnp.float32, -k_rnn, k_rnn),
                "w_hh": jax.random.uniform(next(it), (HIDDEN, HIDDEN), jnp.float32, -k_rnn, k_rnn),
                "b_ih": jax.random.uniform(next(it), (HIDDEN,), jnp.float32, -k_rnn, k_rnn),
                "b_hh": jax.random.uniform(next(it), (HIDDEN,), jnp.float32, -k_rnn, k_rnn),
            })
        rnn.append(dirs)
    params["rnn"] = rnn

    k_fc = 1.0 / jnp.sqrt(2 * HIDDEN)
    params["fc_w"] = jax.random.uniform(next(it), (NUM_CLASSES, 2 * HIDDEN), jnp.float32, -k_fc, k_fc)
    params["fc_b"] = jax.random.uniform(next(it), (NUM_CLASSES,), jnp.float32, -k_fc, k_fc)
    return params


def pack_params(params):
    """One-time parameter packing into a single lane-dense (rows, 2H) f32 slab."""
    H, L, V, C = HIDDEN, NUM_LAYERS, VOCAB, NUM_CLASSES
    H2 = 2 * H
    blocks = []

    # Layer-0 input projection with embedding + fused biases folded in.
    w_in0 = jnp.concatenate([params["rnn"][0][0]["w_ih"].T,
                             params["rnn"][0][1]["w_ih"].T], axis=1)              # (E, 2H)
    b0 = jnp.concatenate([params["rnn"][0][0]["b_ih"] + params["rnn"][0][0]["b_hh"],
                          params["rnn"][0][1]["b_ih"] + params["rnn"][0][1]["b_hh"]])
    w0b = params["embedding"] @ w_in0 + b0[None, :]                               # (V, 2H)
    blocks.append(jnp.concatenate([w0b, jnp.zeros((VP - V, H2), jnp.float32)], 0))

    # Input projections for layers >= 1 (directions fused along lanes).
    for l in range(1, L):
        blocks.append(jnp.concatenate([params["rnn"][l][0]["w_ih"].T,
                                       params["rnn"][l][1]["w_ih"].T], axis=1))   # (2H, 2H)

    # Block-diagonal hidden-to-hidden weights per layer (pre-transposed).
    for l in range(L):
        wf = params["rnn"][l][0]["w_hh"].T
        wb = params["rnn"][l][1]["w_hh"].T
        z = jnp.zeros((H, H), jnp.float32)
        blocks.append(jnp.concatenate([jnp.concatenate([wf, z], 1),
                                       jnp.concatenate([z, wb], 1)], 0))          # (2H, 2H)

    # Fused biases for layers >= 1 (8-row block; row l-1 = layer l).
    bias_blk = jnp.zeros((8, H2), jnp.float32)
    for l in range(1, L):
        bl = jnp.concatenate([params["rnn"][l][0]["b_ih"] + params["rnn"][l][0]["b_hh"],
                              params["rnn"][l][1]["b_ih"] + params["rnn"][l][1]["b_hh"]])
        bias_blk = bias_blk.at[l - 1].set(bl)
    blocks.append(bias_blk)

    # FC weight (2H, C) padded to (2H, 2H) with zero columns.
    blocks.append(jnp.zeros((H2, H2), jnp.float32).at[:, :C].set(params["fc_w"].T))

    # FC bias row: [fc_b | NEG ...] so padded logit lanes vanish under softmax.
    fcb = jnp.zeros((8, H2), jnp.float32)
    fcb = fcb.at[0, :].set(jnp.full((H2,), NEG, jnp.float32))
    fcb = fcb.at[0, :C].set(params["fc_b"])
    blocks.append(fcb)

    return jnp.concatenate(blocks, axis=0)


def textrnn_forward(ids, packed):
    B, T = ids.shape
    # Pad batch to a full sublane tile; padded rows get token 0 (ignored at output).
    ids_p = jnp.zeros((BP, T), jnp.int32).at[:B, :].set(ids.astype(jnp.int32))
    ids_flat = ids_p.T.reshape(T * BP, 1)                     # row t*BP + b, t-major

    kernel = functools.partial(textrnn_kernel, NUM_LAYERS, BP, T, HIDDEN, VP, NUM_CLASSES)
    return pl.pallas_call(
        kernel,
        out_shape=jax.ShapeDtypeStruct((B, NUM_CLASSES), jnp.float32),
        in_specs=[pl.BlockSpec(memory_space=pltpu.MemorySpace.VMEM),
                  pl.BlockSpec(memory_space=pltpu.MemorySpace.VMEM)],
        out_specs=pl.BlockSpec(memory_space=pltpu.MemorySpace.VMEM),
        scratch_shapes=[pltpu.VMEM((T * BP, 2 * HIDDEN), jnp.float32),   # step-ordered h
                        pltpu.VMEM((T * BP, 2 * HIDDEN), jnp.float32)],  # reverse-ordered h
    )(ids_flat, packed)


def textrnn_reference(ids, params):
    """Pure-JAX reference with identical PyTorch nn.RNN semantics (eval mode)."""
    emb = params["embedding"][ids]                                   # (B, T, E)
    B, T, _ = emb.shape
    cur = emb
    for layer in range(NUM_LAYERS):
        outs_dirs = []
        for d, reverse in ((0, False), (1, True)):
            p = params["rnn"][layer][d]
            h = jnp.zeros((B, HIDDEN), jnp.float32)
            outs = [None] * T
            order = range(T - 1, -1, -1) if reverse else range(T)
            for t in order:
                h = jnp.tanh(cur[:, t, :] @ p["w_ih"].T + p["b_ih"] + h @ p["w_hh"].T + p["b_hh"])
                outs[t] = h
            outs_dirs.append(jnp.stack(outs, axis=1))
        cur = jnp.concatenate(outs_dirs, axis=-1)                     # (B, T, 2H)
    logits = cur[:, -1, :] @ params["fc_w"].T + params["fc_b"]
    return jax.nn.softmax(logits, axis=1)


if __name__ == "__main__":
    key = jax.random.PRNGKey(0)
    k_ids, k_params = jax.random.split(key)
    ids = jax.random.randint(k_ids, (BATCH, SEQ), 0, VOCAB, dtype=jnp.int32)
    params = init_params(k_params)
    packed = pack_params(params)          # one-time parameter preparation (embedding folded here)

    out = textrnn_forward(ids, packed)
    jax.block_until_ready(out)

    ref = textrnn_reference(ids, params)
    assert out.shape == (BATCH, NUM_CLASSES)
    assert jnp.allclose(out, ref, atol=1e-5, rtol=1e-5), (out, ref)

    print("KERNEL_OK")
</pallas_src>

<mosaic_0001>
module attributes {stable_mosaic.version = 11 : i64} {
  func.func @textrnn_kernel(%arg0: memref<64x1xi32, #tpu.memory_space<vmem>>, %arg1: memref<328x64xf32, #tpu.memory_space<vmem>>, %arg2: memref<2x4xf32, #tpu.memory_space<vmem>>, %arg3: memref<64x64xf32, #tpu.memory_space<vmem>>, %arg4: memref<64x64xf32, #tpu.memory_space<vmem>>) attributes {dimension_semantics = [], scalar_prefetch = 0 : i64, scratch_operands = 2 : i64, tpu.core_type = #tpu.core_type<tc>} {
    %0 = tpu.iota {dimensions = array<i32: 1>} : vector<8x64xi32>
    %c32_i32 = arith.constant 32 : i32
    %1 = vector.broadcast %c32_i32 : i32 to vector<8x64xi32>
    %2 = arith.cmpi slt, %0, %1 : vector<8x64xi32>
    %3 = tpu.iota {dimensions = array<i32: 1>} : vector<64x64xi32>
    %c32_i32_0 = arith.constant 32 : i32
    %4 = vector.broadcast %c32_i32_0 : i32 to vector<64x64xi32>
    %5 = arith.cmpi slt, %3, %4 : vector<64x64xi32>
    %c0 = arith.constant 0 : index
    %c0_1 = arith.constant 0 : index
    %6 = vector.load %arg0[%c0, %c0_1] : memref<64x1xi32, #tpu.memory_space<vmem>>, vector<64x1xi32>
    %7 = tpu.iota {dimensions = array<i32: 1>} : vector<64x56xi32>
    %8 = vector.broadcast %6 : vector<64x1xi32> to vector<64x56xi32>
    %9 = arith.cmpi eq, %7, %8 : vector<64x56xi32>
    %10 = arith.extui %9 : vector<64x56xi1> to vector<64x56xi32>
    %11 = arith.sitofp %10 : vector<64x56xi32> to vector<64x56xf32>
    %c0_2 = arith.constant 0 : index
    %c0_3 = arith.constant 0 : index
    %12 = vector.load %arg1[%c0_2, %c0_3] : memref<328x64xf32, #tpu.memory_space<vmem>>, vector<56x64xf32>
    %cst = arith.constant dense<0.000000e+00> : vector<64x64xf32>
    %13 = tpu.matmul %11, %12, %cst {dimension_numbers = #tpu.dot_dimension_numbers<[1], [0], [0], [1], [0, 0, 1, 1], [], []>} : vector<64x56xf32>, vector<56x64xf32>, vector<64x64xf32> -> vector<64x64xf32>
    %c120 = arith.constant 120 : index
    %c0_4 = arith.constant 0 : index
    %14 = vector.load %arg1[%c120, %c0_4] : memref<328x64xf32, #tpu.memory_space<vmem>>, vector<64x64xf32>
    %cst_5 = arith.constant 0.000000e+00 : f32
    %15 = vector.broadcast %cst_5 : f32 to vector<8x64xf32>
    %16 = vector.extract_strided_slice %13 {offsets = [0, 0], sizes = [8, 64], strides = [1, 1]} : vector<64x64xf32> to vector<8x64xf32>
    %17 = vector.extract_strided_slice %13 {offsets = [56, 0], sizes = [8, 64], strides = [1, 1]} : vector<64x64xf32> to vector<8x64xf32>
    %18 = arith.select %2, %16, %17 : vector<8x64xi1>, vector<8x64xf32>
    %cst_6 = arith.constant dense<0.000000e+00> : vector<8x64xf32>
    %19 = tpu.matmul %15, %14, %cst_6 {dimension_numbers = #tpu.dot_dimension_numbers<[1], [0], [0], [1], [0, 0, 1, 1], [], []>} : vector<8x64xf32>, vector<64x64xf32>, vector<8x64xf32> -> vector<8x64xf32>
    %20 = arith.addf %18, %19 : vector<8x64xf32>
    %21 = math.tanh %20 : vector<8x64xf32>
    %c0_7 = arith.constant 0 : index
    %c0_8 = arith.constant 0 : index
    %22 = vector.load %arg3[%c0_7, %c0_8] : memref<64x64xf32, #tpu.memory_space<vmem>>, vector<8x64xf32>
    tpu.vector_store %arg3[%c0_7, %c0_8], %21 {strides = array<i32>} : memref<64x64xf32, #tpu.memory_space<vmem>>, vector<8x64xf32>,
    %c56 = arith.constant 56 : index
    %c0_9 = arith.constant 0 : index
    %23 = vector.load %arg4[%c56, %c0_9] : memref<64x64xf32, #tpu.memory_space<vmem>>, vector<8x64xf32>
    tpu.vector_store %arg4[%c56, %c0_9], %21 {strides = array<i32>} : memref<64x64xf32, #tpu.memory_space<vmem>>, vector<8x64xf32>,
    %24 = vector.extract_strided_slice %13 {offsets = [8, 0], sizes = [8, 64], strides = [1, 1]} : vector<64x64xf32> to vector<8x64xf32>
    %25 = vector.extract_strided_slice %13 {offsets = [48, 0], sizes = [8, 64], strides = [1, 1]} : vector<64x64xf32> to vector<8x64xf32>
    %26 = arith.select %2, %24, %25 : vector<8x64xi1>, vector<8x64xf32>
    %cst_10 = arith.constant dense<0.000000e+00> : vector<8x64xf32>
    %27 = tpu.matmul %21, %14, %cst_10 {dimension_numbers = #tpu.dot_dimension_numbers<[1], [0], [0], [1], [0, 0, 1, 1], [], []>} : vector<8x64xf32>, vector<64x64xf32>, vector<8x64xf32> -> vector<8x64xf32>
    %28 = arith.addf %26, %27 : vector<8x64xf32>
    %29 = math.tanh %28 : vector<8x64xf32>
    %c8 = arith.constant 8 : index
    %c0_11 = arith.constant 0 : index
    %30 = vector.load %arg3[%c8, %c0_11] : memref<64x64xf32, #tpu.memory_space<vmem>>, vector<8x64xf32>
    tpu.vector_store %arg3[%c8, %c0_11], %29 {strides = array<i32>} : memref<64x64xf32, #tpu.memory_space<vmem>>, vector<8x64xf32>,
    %c48 = arith.constant 48 : index
    %c0_12 = arith.constant 0 : index
    %31 = vector.load %arg4[%c48, %c0_12] : memref<64x64xf32, #tpu.memory_space<vmem>>, vector<8x64xf32>
    tpu.vector_store %arg4[%c48, %c0_12], %29 {strides = array<i32>} : memref<64x64xf32, #tpu.memory_space<vmem>>, vector<8x64xf32>,
    %32 = vector.extract_strided_slice %13 {offsets = [16, 0], sizes = [8, 64], strides = [1, 1]} : vector<64x64xf32> to vector<8x64xf32>
    %33 = vector.extract_strided_slice %13 {offsets = [40, 0], sizes = [8, 64], strides = [1, 1]} : vector<64x64xf32> to vector<8x64xf32>
    %34 = arith.select %2, %32, %33 : vector<8x64xi1>, vector<8x64xf32>
    %cst_13 = arith.constant dense<0.000000e+00> : vector<8x64xf32>
    %35 = tpu.matmul %29, %14, %cst_13 {dimension_numbers = #tpu.dot_dimension_numbers<[1], [0], [0], [1], [0, 0, 1, 1], [], []>} : vector<8x64xf32>, vector<64x64xf32>, vector<8x64xf32> -> vector<8x64xf32>
    %36 = arith.addf %34, %35 : vector<8x64xf32>
    %37 = math.tanh %36 : vector<8x64xf32>
    %c16 = arith.constant 16 : index
    %c0_14 = arith.constant 0 : index
    %38 = vector.load %arg3[%c16, %c0_14] : memref<64x64xf32, #tpu.memory_space<vmem>>, vector<8x64xf32>
    tpu.vector_store %arg3[%c16, %c0_14], %37 {strides = array<i32>} : memref<64x64xf32, #tpu.memory_space<vmem>>, vector<8x64xf32>,
    %c40 = arith.constant 40 : index
    %c0_15 = arith.constant 0 : index
    %39 = vector.load %arg4[%c40, %c0_15] : memref<64x64xf32, #tpu.memory_space<vmem>>, vector<8x64xf32>
    tpu.vector_store %arg4[%c40, %c0_15], %37 {strides = array<i32>} : memref<64x64xf32, #tpu.memory_space<vmem>>, vector<8x64xf32>,
    %40 = vector.extract_strided_slice %13 {offsets = [24, 0], sizes = [8, 64], strides = [1, 1]} : vector<64x64xf32> to vector<8x64xf32>
    %41 = vector.extract_strided_slice %13 {offsets = [32, 0], sizes = [8, 64], strides = [1, 1]} : vector<64x64xf32> to vector<8x64xf32>
    %42 = arith.select %2, %40, %41 : vector<8x64xi1>, vector<8x64xf32>
    %cst_16 = arith.constant dense<0.000000e+00> : vector<8x64xf32>
    %43 = tpu.matmul %37, %14, %cst_16 {dimension_numbers = #tpu.dot_dimension_numbers<[1], [0], [0], [1], [0, 0, 1, 1], [], []>} : vector<8x64xf32>, vector<64x64xf32>, vector<8x64xf32> -> vector<8x64xf32>
    %44 = arith.addf %42, %43 : vector<8x64xf32>
    %45 = math.tanh %44 : vector<8x64xf32>
    %c24 = arith.constant 24 : index
    %c0_17 = arith.constant 0 : index
    %46 = vector.load %arg3[%c24, %c0_17] : memref<64x64xf32, #tpu.memory_space<vmem>>, vector<8x64xf32>
    tpu.vector_store %arg3[%c24, %c0_17], %45 {strides = array<i32>} : memref<64x64xf32, #tpu.memory_space<vmem>>, vector<8x64xf32>,
    %c32 = arith.constant 32 : index
    %c0_18 = arith.constant 0 : index
    %47 = vector.load %arg4[%c32, %c0_18] : memref<64x64xf32, #tpu.memory_space<vmem>>, vector<8x64xf32>
    tpu.vector_store %arg4[%c32, %c0_18], %45 {strides = array<i32>} : memref<64x64xf32, #tpu.memory_space<vmem>>, vector<8x64xf32>,
    %48 = vector.extract_strided_slice %13 {offsets = [32, 0], sizes = [8, 64], strides = [1, 1]} : vector<64x64xf32> to vector<8x64xf32>
    %49 = vector.extract_strided_slice %13 {offsets = [24, 0], sizes = [8, 64], strides = [1, 1]} : vector<64x64xf32> to vector<8x64xf32>
    %50 = arith.select %2, %48, %49 : vector<8x64xi1>, vector<8x64xf32>
    %cst_19 = arith.constant dense<0.000000e+00> : vector<8x64xf32>
    %51 = tpu.matmul %45, %14, %cst_19 {dimension_numbers = #tpu.dot_dimension_numbers<[1], [0], [0], [1], [0, 0, 1, 1], [], []>} : vector<8x64xf32>, vector<64x64xf32>, vector<8x64xf32> -> vector<8x64xf32>
    %52 = arith.addf %50, %51 : vector<8x64xf32>
    %53 = math.tanh %52 : vector<8x64xf32>
    %c32_20 = arith.constant 32 : index
    %c0_21 = arith.constant 0 : index
    %54 = vector.load %arg3[%c32_20, %c0_21] : memref<64x64xf32, #tpu.memory_space<vmem>>, vector<8x64xf32>
    tpu.vector_store %arg3[%c32_20, %c0_21], %53 {strides = array<i32>} : memref<64x64xf32, #tpu.memory_space<vmem>>, vector<8x64xf32>,
    %c24_22 = arith.constant 24 : index
    %c0_23 = arith.constant 0 : index
    %55 = vector.load %arg4[%c24_22, %c0_23] : memref<64x64xf32, #tpu.memory_space<vmem>>, vector<8x64xf32>
    tpu.vector_store %arg4[%c24_22, %c0_23], %53 {strides = array<i32>} : memref<64x64xf32, #tpu.memory_space<vmem>>, vector<8x64xf32>,
    %56 = vector.extract_strided_slice %13 {offsets = [40, 0], sizes = [8, 64], strides = [1, 1]} : vector<64x64xf32> to vector<8x64xf32>
    %57 = vector.extract_strided_slice %13 {offsets = [16, 0], sizes = [8, 64], strides = [1, 1]} : vector<64x64xf32> to vector<8x64xf32>
    %58 = arith.select %2, %56, %57 : vector<8x64xi1>, vector<8x64xf32>
    %cst_24 = arith.constant dense<0.000000e+00> : vector<8x64xf32>
    %59 = tpu.matmul %53, %14, %cst_24 {dimension_numbers = #tpu.dot_dimension_numbers<[1], [0], [0], [1], [0, 0, 1, 1], [], []>} : vector<8x64xf32>, vector<64x64xf32>, vector<8x64xf32> -> vector<8x64xf32>
    %60 = arith.addf %58, %59 : vector<8x64xf32>
    %61 = math.tanh %60 : vector<8x64xf32>
    %c40_25 = arith.constant 40 : index
    %c0_26 = arith.constant 0 : index
    %62 = vector.load %arg3[%c40_25, %c0_26] : memref<64x64xf32, #tpu.memory_space<vmem>>, vector<8x64xf32>
    tpu.vector_store %arg3[%c40_25, %c0_26], %61 {strides = array<i32>} : memref<64x64xf32, #tpu.memory_space<vmem>>, vector<8x64xf32>,
    %c16_27 = arith.constant 16 : index
    %c0_28 = arith.constant 0 : index
    %63 = vector.load %arg4[%c16_27, %c0_28] : memref<64x64xf32, #tpu.memory_space<vmem>>, vector<8x64xf32>
    tpu.vector_store %arg4[%c16_27, %c0_28], %61 {strides = array<i32>} : memref<64x64xf32, #tpu.memory_space<vmem>>, vector<8x64xf32>,
    %64 = vector.extract_strided_slice %13 {offsets = [48, 0], sizes = [8, 64], strides = [1, 1]} : vector<64x64xf32> to vector<8x64xf32>
    %65 = vector.extract_strided_slice %13 {offsets = [8, 0], sizes = [8, 64], strides = [1, 1]} : vector<64x64xf32> to vector<8x64xf32>
    %66 = arith.select %2, %64, %65 : vector<8x64xi1>, vector<8x64xf32>
    %cst_29 = arith.constant dense<0.000000e+00> : vector<8x64xf32>
    %67 = tpu.matmul %61, %14, %cst_29 {dimension_numbers = #tpu.dot_dimension_numbers<[1], [0], [0], [1], [0, 0, 1, 1], [], []>} : vector<8x64xf32>, vector<64x64xf32>, vector<8x64xf32> -> vector<8x64xf32>
    %68 = arith.addf %66, %67 : vector<8x64xf32>
    %69 = math.tanh %68 : vector<8x64xf32>
    %c48_30 = arith.constant 48 : index
    %c0_31 = arith.constant 0 : index
    %70 = vector.load %arg3[%c48_30, %c0_31] : memref<64x64xf32, #tpu.memory_space<vmem>>, vector<8x64xf32>
    tpu.vector_store %arg3[%c48_30, %c0_31], %69 {strides = array<i32>} : memref<64x64xf32, #tpu.memory_space<vmem>>, vector<8x64xf32>,
    %c8_32 = arith.constant 8 : index
    %c0_33 = arith.constant 0 : index
    %71 = vector.load %arg4[%c8_32, %c0_33] : memref<64x64xf32, #tpu.memory_space<vmem>>, vector<8x64xf32>
    tpu.vector_store %arg4[%c8_32, %c0_33], %69 {strides = array<i32>} : memref<64x64xf32, #tpu.memory_space<vmem>>, vector<8x64xf32>,
    %72 = vector.extract_strided_slice %13 {offsets = [56, 0], sizes = [8, 64], strides = [1, 1]} : vector<64x64xf32> to vector<8x64xf32>
    %73 = vector.extract_strided_slice %13 {offsets = [0, 0], sizes = [8, 64], strides = [1, 1]} : vector<64x64xf32> to vector<8x64xf32>
    %74 = arith.select %2, %72, %73 : vector<8x64xi1>, vector<8x64xf32>
    %cst_34 = arith.constant dense<0.000000e+00> : vector<8x64xf32>
    %75 = tpu.matmul %69, %14, %cst_34 {dimension_numbers = #tpu.dot_dimension_numbers<[1], [0], [0], [1], [0, 0, 1, 1], [], []>} : vector<8x64xf32>, vector<64x64xf32>, vector<8x64xf32> -> vector<8x64xf32>
    %76 = arith.addf %74, %75 : vector<8x64xf32>
    %77 = math.tanh %76 : vector<8x64xf32>
    %c56_35 = arith.constant 56 : index
    %c0_36 = arith.constant 0 : index
    %78 = vector.load %arg3[%c56_35, %c0_36] : memref<64x64xf32, #tpu.memory_space<vmem>>, vector<8x64xf32>
    tpu.vector_store %arg3[%c56_35, %c0_36], %77 {strides = array<i32>} : memref<64x64xf32, #tpu.memory_space<vmem>>, vector<8x64xf32>,
    %c0_37 = arith.constant 0 : index
    %c0_38 = arith.constant 0 : index
    %79 = vector.load %arg4[%c0_37, %c0_38] : memref<64x64xf32, #tpu.memory_space<vmem>>, vector<8x64xf32>
    tpu.vector_store %arg4[%c0_37, %c0_38], %77 {strides = array<i32>} : memref<64x64xf32, #tpu.memory_space<vmem>>, vector<8x64xf32>,
    %c0_39 = arith.constant 0 : index
    %c0_40 = arith.constant 0 : index
    %80 = vector.load %arg3[%c0_39, %c0_40] : memref<64x64xf32, #tpu.memory_space<vmem>>, vector<64x64xf32>
    %c0_41 = arith.constant 0 : index
    %c0_42 = arith.constant 0 : index
    %81 = vector.load %arg4[%c0_41, %c0_42] : memref<64x64xf32, #tpu.memory_space<vmem>>, vector<64x64xf32>
    %82 = arith.select %5, %80, %81 : vector<64x64xi1>, vector<64x64xf32>
    %c56_43 = arith.constant 56 : index
    %c0_44 = arith.constant 0 : index
    %83 = vector.load %arg1[%c56_43, %c0_44] : memref<328x64xf32, #tpu.memory_space<vmem>>, vector<64x64xf32>
    %c248 = arith.constant 248 : index
    %c0_45 = arith.constant 0 : index
    %84 = vector.load %arg1[%c248, %c0_45] : memref<328x64xf32, #tpu.memory_space<vmem>>, vector<1x64xf32>
    %cst_46 = arith.constant dense<0.000000e+00> : vector<64x64xf32>
    %85 = tpu.matmul %82, %83, %cst_46 {dimension_numbers = #tpu.dot_dimension_numbers<[1], [0], [0], [1], [0, 0, 1, 1], [], []>} : vector<64x64xf32>, vector<64x64xf32>, vector<64x64xf32> -> vector<64x64xf32>
    %86 = vector.broadcast %84 : vector<1x64xf32> to vector<64x64xf32>
    %87 = arith.addf %85, %86 : vector<64x64xf32>
    %c184 = arith.constant 184 : index
    %c0_47 = arith.constant 0 : index
    %88 = vector.load %arg1[%c184, %c0_47] : memref<328x64xf32, #tpu.memory_space<vmem>>, vector<64x64xf32>
    %cst_48 = arith.constant 0.000000e+00 : f32
    %89 = vector.broadcast %cst_48 : f32 to vector<8x64xf32>
    %90 = vector.extract_strided_slice %87 {offsets = [0, 0], sizes = [8, 64], strides = [1, 1]} : vector<64x64xf32> to vector<8x64xf32>
    %91 = vector.extract_strided_slice %87 {offsets = [56, 0], sizes = [8, 64], strides = [1, 1]} : vector<64x64xf32> to vector<8x64xf32>
    %92 = arith.select %2, %90, %91 : vector<8x64xi1>, vector<8x64xf32>
    %cst_49 = arith.constant dense<0.000000e+00> : vector<8x64xf32>
    %93 = tpu.matmul %89, %88, %cst_49 {dimension_numbers = #tpu.dot_dimension_numbers<[1], [0], [0], [1], [0, 0, 1, 1], [], []>} : vector<8x64xf32>, vector<64x64xf32>, vector<8x64xf32> -> vector<8x64xf32>
    %94 = arith.addf %92, %93 : vector<8x64xf32>
    %95 = math.tanh %94 : vector<8x64xf32>
    %96 = vector.extract_strided_slice %87 {offsets = [8, 0], sizes = [8, 64], strides = [1, 1]} : vector<64x64xf32> to vector<8x64xf32>
    %97 = vector.extract_strided_slice %87 {offsets = [48, 0], sizes = [8, 64], strides = [1, 1]} : vector<64x64xf32> to vector<8x64xf32>
    %98 = arith.select %2, %96, %97 : vector<8x64xi1>, vector<8x64xf32>
    %cst_50 = arith.constant dense<0.000000e+00> : vector<8x64xf32>
    %99 = tpu.matmul %95, %88, %cst_50 {dimension_numbers = #tpu.dot_dimension_numbers<[1], [0], [0], [1], [0, 0, 1, 1], [], []>} : vector<8x64xf32>, vector<64x64xf32>, vector<8x64xf32> -> vector<8x64xf32>
    %100 = arith.addf %98, %99 : vector<8x64xf32>
    %101 = math.tanh %100 : vector<8x64xf32>
    %102 = vector.extract_strided_slice %87 {offsets = [16, 0], sizes = [8, 64], strides = [1, 1]} : vector<64x64xf32> to vector<8x64xf32>
    %103 = vector.extract_strided_slice %87 {offsets = [40, 0], sizes = [8, 64], strides = [1, 1]} : vector<64x64xf32> to vector<8x64xf32>
    %104 = arith.select %2, %102, %103 : vector<8x64xi1>, vector<8x64xf32>
    %cst_51 = arith.constant dense<0.000000e+00> : vector<8x64xf32>
    %105 = tpu.matmul %101, %88, %cst_51 {dimension_numbers = #tpu.dot_dimension_numbers<[1], [0], [0], [1], [0, 0, 1, 1], [], []>} : vector<8x64xf32>, vector<64x64xf32>, vector<8x64xf32> -> vector<8x64xf32>
    %106 = arith.addf %104, %105 : vector<8x64xf32>
    %107 = math.tanh %106 : vector<8x64xf32>
    %108 = vector.extract_strided_slice %87 {offsets = [24, 0], sizes = [8, 64], strides = [1, 1]} : vector<64x64xf32> to vector<8x64xf32>
    %109 = vector.extract_strided_slice %87 {offsets = [32, 0], sizes = [8, 64], strides = [1, 1]} : vector<64x64xf32> to vector<8x64xf32>
    %110 = arith.select %2, %108, %109 : vector<8x64xi1>, vector<8x64xf32>
    %cst_52 = arith.constant dense<0.000000e+00> : vector<8x64xf32>
    %111 = tpu.matmul %107, %88, %cst_52 {dimension_numbers = #tpu.dot_dimension_numbers<[1], [0], [0], [1], [0, 0, 1, 1], [], []>} : vector<8x64xf32>, vector<64x64xf32>, vector<8x64xf32> -> vector<8x64xf32>
    %112 = arith.addf %110, %111 : vector<8x64xf32>
    %113 = math.tanh %112 : vector<8x64xf32>
    %114 = vector.extract_strided_slice %87 {offsets = [32, 0], sizes = [8, 64], strides = [1, 1]} : vector<64x64xf32> to vector<8x64xf32>
    %115 = vector.extract_strided_slice %87 {offsets = [24, 0], sizes = [8, 64], strides = [1, 1]} : vector<64x64xf32> to vector<8x64xf32>
    %116 = arith.select %2, %114, %115 : vector<8x64xi1>, vector<8x64xf32>
    %cst_53 = arith.constant dense<0.000000e+00> : vector<8x64xf32>
    %117 = tpu.matmul %113, %88, %cst_53 {dimension_numbers = #tpu.dot_dimension_numbers<[1], [0], [0], [1], [0, 0, 1, 1], [], []>} : vector<8x64xf32>, vector<64x64xf32>, vector<8x64xf32> -> vector<8x64xf32>
    %118 = arith.addf %116, %117 : vector<8x64xf32>
    %119 = math.tanh %118 : vector<8x64xf32>
    %120 = vector.extract_strided_slice %87 {offsets = [40, 0], sizes = [8, 64], strides = [1, 1]} : vector<64x64xf32> to vector<8x64xf32>
    %121 = vector.extract_strided_slice %87 {offsets = [16, 0], sizes = [8, 64], strides = [1, 1]} : vector<64x64xf32> to vector<8x64xf32>
    %122 = arith.select %2, %120, %121 : vector<8x64xi1>, vector<8x64xf32>
    %cst_54 = arith.constant dense<0.000000e+00> : vector<8x64xf32>
    %123 = tpu.matmul %119, %88, %cst_54 {dimension_numbers = #tpu.dot_dimension_numbers<[1], [0], [0], [1], [0, 0, 1, 1], [], []>} : vector<8x64xf32>, vector<64x64xf32>, vector<8x64xf32> -> vector<8x64xf32>
    %124 = arith.addf %122, %123 : vector<8x64xf32>
    %125 = math.tanh %124 : vector<8x64xf32>
    %126 = vector.extract_strided_slice %87 {offsets = [48, 0], sizes = [8, 64], strides = [1, 1]} : vector<64x64xf32> to vector<8x64xf32>
    %127 = vector.extract_strided_slice %87 {offsets = [8, 0], sizes = [8, 64], strides = [1, 1]} : vector<64x64xf32> to vector<8x64xf32>
    %128 = arith.select %2, %126, %127 : vector<8x64xi1>, vector<8x64xf32>
    %cst_55 = arith.constant dense<0.000000e+00> : vector<8x64xf32>
    %129 = tpu.matmul %125, %88, %cst_55 {dimension_numbers = #tpu.dot_dimension_numbers<[1], [0], [0], [1], [0, 0, 1, 1], [], []>} : vector<8x64xf32>, vector<64x64xf32>, vector<8x64xf32> -> vector<8x64xf32>
    %130 = arith.addf %128, %129 : vector<8x64xf32>
    %131 = math.tanh %130 : vector<8x64xf32>
    %132 = vector.extract_strided_slice %87 {offsets = [56, 0], sizes = [8, 64], strides = [1, 1]} : vector<64x64xf32> to vector<8x64xf32>
    %133 = vector.extract_strided_slice %87 {offsets = [0, 0], sizes = [8, 64], strides = [1, 1]} : vector<64x64xf32> to vector<8x64xf32>
    %134 = arith.select %2, %132, %133 : vector<8x64xi1>, vector<8x64xf32>
    %cst_56 = arith.constant dense<0.000000e+00> : vector<8x64xf32>
    %135 = tpu.matmul %131, %88, %cst_56 {dimension_numbers = #tpu.dot_dimension_numbers<[1], [0], [0], [1], [0, 0, 1, 1], [], []>} : vector<8x64xf32>, vector<64x64xf32>, vector<8x64xf32> -> vector<8x64xf32>
    %136 = arith.addf %134, %135 : vector<8x64xf32>
    %137 = math.tanh %136 : vector<8x64xf32>
    %138 = arith.select %2, %137, %95 : vector<8x64xi1>, vector<8x64xf32>
    %c256 = arith.constant 256 : index
    %c0_57 = arith.constant 0 : index
    %139 = vector.load %arg1[%c256, %c0_57] : memref<328x64xf32, #tpu.memory_space<vmem>>, vector<64x64xf32>
    %c320 = arith.constant 320 : index
    %c0_58 = arith.constant 0 : index
    %140 = vector.load %arg1[%c320, %c0_58] : memref<328x64xf32, #tpu.memory_space<vmem>>, vector<1x64xf32>
    %cst_59 = arith.constant dense<0.000000e+00> : vector<8x64xf32>
    %141 = tpu.matmul %138, %139, %cst_59 {dimension_numbers = #tpu.dot_dimension_numbers<[1], [0], [0], [1], [0, 0, 1, 1], [], []>} : vector<8x64xf32>, vector<64x64xf32>, vector<8x64xf32> -> vector<8x64xf32>
    %142 = vector.broadcast %140 : vector<1x64xf32> to vector<8x64xf32>
    %143 = arith.addf %141, %142 : vector<8x64xf32>
    %cst_60 = arith.constant dense<0xFF800000> : vector<8xf32>
    %144 = vector.multi_reduction <maximumf>, %143, %cst_60 [1] : vector<8x64xf32> to vector<8xf32>
    %145 = vector.shape_cast %144 : vector<8xf32> to vector<8x1xf32>
    %146 = vector.broadcast %145 : vector<8x1xf32> to vector<8x64xf32>
    %147 = arith.subf %143, %146 : vector<8x64xf32>
    %148 = math.exp %147 : vector<8x64xf32>
    %cst_61 = arith.constant dense<0.000000e+00> : vector<8xf32>
    %149 = vector.multi_reduction <add>, %148, %cst_61 [1] : vector<8x64xf32> to vector<8xf32>
    %150 = vector.shape_cast %149 : vector<8xf32> to vector<8x1xf32>
    %151 = vector.broadcast %150 : vector<8x1xf32> to vector<8x64xf32>
    %152 = arith.divf %148, %151 : vector<8x64xf32>
    %153 = vector.extract_strided_slice %152 {offsets = [0, 0], sizes = [2, 4], strides = [1, 1]} : vector<8x64xf32> to vector<2x4xf32>
    %c0_62 = arith.constant 0 : index
    %c0_63 = arith.constant 0 : index
    %154 = vector.load %arg2[%c0_62, %c0_63] : memref<2x4xf32, #tpu.memory_space<vmem>>, vector<2x4xf32>
    tpu.vector_store %arg2[%c0_62, %c0_63], %153 {strides = array<i32>} : memref<2x4xf32, #tpu.memory_space<vmem>>, vector<2x4xf32>,
    return
  }
}

</mosaic_0001>

<bundles_post_ra>
// kernel: tpu_custom_call.1
= control target key start
LH: loop header
LB: loop body
LE: loop exit
PB: predicated region body
PF: predicated region fallthrough
CT: control target
= control target key end

     0   :  { %v874_v2 = vmov 0   ;;  %s1330_s0 = inlined_call_operand.vmem [shape: s32[64,1], index: 0, kind: input, shape index: {}]   ;;  %s1331_s1 = inlined_call_operand.vmem [shape: f32[328,64], index: 1, kind: input, shape index: {}]   ;;  %s1332_s2 = inlined_call_operand.hbm [shape: f32[2,4], index: 2, kind: output, shape index: {}]  }
   0x1   :  { %v17_v0 = vld [vmem:[%s1330_s0 + $0x10] sm:$0xff]  ;;  %v15_v1 = vld [vmem:[%s1330_s0] sm:$0xff]  ;;  %808 = vset.pattern.permute.xlu1 %v874_v2  ;;  %807 = vset.pattern.permute.xlu0 %v874_v2  ;;  %v76_v5 = vld [vmem:[%s1331_s1 + $0x28] sm:$0xff] }
   0x2   :  { %30 = vperm.xlu1 %808, %v17_v0   ;;  %24 = vperm.xlu0 %807, %v15_v1   ;;  %v19_v3 = vld [vmem:[%s1330_s0 + $0x20] sm:$0xff]  ;;  %v77_v4 = vld [vmem:[%s1331_s1 + $0x30] sm:$0xff] }
   0x3   :  { %809 = vset.pattern.permute.xlu2 %v874_v2  ;;  %112 = vmatpush.msra.mxu0 %v77_v4  ;;  %v75_v6 = vld [vmem:[%s1331_s1 + $0x20] sm:$0xff] }
   0x4   :  { %36 = vperm.xlu2 %809, %v19_v3  }
   0x5   :  { %113 = vmatpush.msra.mxu0 %v76_v5 }
   0x6   :  { %7 = vsyncpa [#allocation5], 0  ;;  %v74_v7 = vld [vmem:[%s1331_s1 + $0x18] sm:$0xff]  ;;  %v16_v9 = vld [vmem:[%s1330_s0 + $0x8] sm:$0xff]  ;;  %v12_v16 = vlaneseq  ;;  %vm78_vm0 = vcmask 457728   ;;  %v875_v19 = vmov 0.0  }
   0x7   :  { %v18_v8 = vld [vmem:[%s1330_s0 + $0x18] sm:$0xff]  ;;  %114 = vmatpush.msra.mxu0 %v75_v6  ;;  %v73_v10 = vld [vmem:[%s1331_s1 + $0x10] sm:$0xff]  ;;  %v20_v11 = vld [vmem:[%s1330_s0 + $0x28] sm:$0xff]  ;;  %vm153_vm10 = vcmask 523264   ;;  %s756_s23 = sshll.u32 %s1332_s2, 4  ;;  %vm747_vm15 = vcmask 25600   ;;  %s757_s23 = int_to_ptr.hbm [resolvable:$true] %s756_s23 }
   0x8   :  { %v72_v12 = vld [vmem:[%s1331_s1 + $0x8] sm:$0xff]  ;;  %v22_v13 = vld [vmem:[%s1330_s0 + $0x38] sm:$0xff]  ;;  %v21_v14 = vld [vmem:[%s1330_s0 + $0x30] sm:$0xff]  ;;  %v937_v17 = vand.u32 127, %v12_v16 }
   0x9   :  { %115 = vmatpush.msra.mxu0 %v74_v7  ;;  %v71_v15 = vld [vmem:[%s1331_s1] sm:$0xff]  ;;  %v948_v23 = vld [vmem:[%s1331_s1 + $0xb0] sm:$0xff]  ;;  %v953_v24 = vld [vmem:[%s1331_s1 + $0xa8] sm:$0xff] }
   0xa   :  { %33 = vperm.xlu1 %808, %v18_v8   ;;  %27 = vperm.xlu0 %807, %v16_v9   ;;  %v961_v26 = vld [vmem:[%s1331_s1 + $0xa0] sm:$0xff]  ;;  %v974_v28 = vld [vmem:[%s1331_s1 + $0x98] sm:$0xff]  ;;  %v981_v29 = vld [vmem:[%s1331_s1 + $0x90] sm:$0xff]  ;;  %vm14_vm9 = vcmp.lt.s32.totalorder %v937_v17, 32 }
   0xb   :  { %116 = vmatpush.msra.mxu0 %v73_v10  ;;  %165 = vmatpush.msra.mxu1 %v948_v23  ;;  %v986_v30 = vld [vmem:[%s1331_s1 + $0x88] sm:$0xff]  ;;  %v994_v32 = vld [vmem:[%s1331_s1 + $0x80] sm:$0xff]  ;;  %v1007_v35 = vld [vmem:[%s1331_s1 + $0x78] sm:$0xff] }
   0xc   :  { %39 = vperm.xlu2 %809, %v20_v11   ;;  %193 = vmatpush.msra.mxu2 %v948_v23  ;;  %v407_v16 = vld [vmem:[%s1331_s1 + $0x68] sm:$0xff] }
   0xd   :  { %117 = vmatpush.msra.mxu0 %v72_v12  ;;  %221 = vmatpush.msra.mxu3 %v948_v23 }
   0xe   :  { %166 = vmatpush.msra.mxu1 %v953_v24  ;;  %194 = vmatpush.msra.mxu2 %v953_v24 }
   0xf   :  { %118 = vmatpush.msra.mxu0 %v71_v15  ;;  %222 = vmatpush.msra.mxu3 %v953_v24  ;;  %v408_v15 = vld [vmem:[%s1331_s1 + $0x70] sm:$0xff] }
  0x10   :  { %167 = vmatpush.msra.mxu1 %v961_v26  ;;  %195 = vmatpush.msra.mxu2 %v961_v26 }
  0x11   :  { %223 = vmatpush.msra.mxu3 %v961_v26 }
  0x12   :  { %45 = vperm.xlu1 %808, %v22_v13   ;;  %42 = vperm.xlu0 %807, %v21_v14  }
  0x13   :  { %168 = vmatpush.msra.mxu1 %v974_v28  ;;  %196 = vmatpush.msra.mxu2 %v974_v28 }
  0x14   :  { %224 = vmatpush.msra.mxu3 %v974_v28 }
  0x15   :  { %169 = vmatpush.msra.mxu1 %v981_v29  ;;  %197 = vmatpush.msra.mxu2 %v981_v29 }
  0x16   :  { %225 = vmatpush.msra.mxu3 %v981_v29 }
  0x17   :  { %170 = vmatpush.msra.mxu1 %v986_v30  ;;  %198 = vmatpush.msra.mxu2 %v986_v30 }
  0x18   :  { %226 = vmatpush.msra.mxu3 %v986_v30 }
  0x19   :  { %171 = vmatpush.msra.mxu1 %v994_v32  ;;  %199 = vmatpush.msra.mxu2 %v994_v32 }
  0x1a   :  { %227 = vmatpush.msra.mxu3 %v994_v32 }
  0x1b   :  { %172 = vmatpush.msra.mxu1 %v1007_v35  ;;  %200 = vmatpush.msra.mxu2 %v1007_v35 }
  0x1c   :  { %173 = vmatmul.f32.vlgmr.msra.gmra.mxu1 %v875_v19  ;;  %228 = vmatpush.msra.mxu3 %v1007_v35 }
  0x1d   :  { %249 = vmatpush.msrb.mxu1 %v948_v23  ;;  %277 = vmatpush.msrb.mxu2 %v948_v23 }
  0x1e   :  { %305 = vmatpush.msrb.mxu3 %v948_v23 }
  0x1f   :  { %250 = vmatpush.msrb.mxu1 %v953_v24  ;;  %278 = vmatpush.msrb.mxu2 %v953_v24 }
  0x20   :  { %306 = vmatpush.msrb.mxu3 %v953_v24 }
  0x21   :  { %251 = vmatpush.msrb.mxu1 %v961_v26  ;;  %279 = vmatpush.msrb.mxu2 %v961_v26 }
  0x22   :  { %307 = vmatpush.msrb.mxu3 %v961_v26 }
  0x23   :  { %252 = vmatpush.msrb.mxu1 %v974_v28  ;;  %280 = vmatpush.msrb.mxu2 %v974_v28 }
  0x24   :  { %308 = vmatpush.msrb.mxu3 %v974_v28 }
  0x25   :  { %253 = vmatpush.msrb.mxu1 %v981_v29  ;;  %281 = vmatpush.msrb.mxu2 %v981_v29 }
  0x26   :  { %309 = vmatpush.msrb.mxu3 %v981_v29 }
  0x27   :  { %254 = vmatpush.msrb.mxu1 %v986_v30  ;;  %282 = vmatpush.msrb.mxu2 %v986_v30 }
  0x28   :  { %310 = vmatpush.msrb.mxu3 %v986_v30 }
  0x29   :  { %255 = vmatpush.msrb.mxu1 %v994_v32  ;;  %283 = vmatpush.msrb.mxu2 %v994_v32 }
  0x2a   :  { %311 = vmatpush.msrb.mxu3 %v994_v32 }
  0x2b   :  { %256 = vmatpush.msrb.mxu1 %v1007_v35  ;;  %284 = vmatpush.msrb.mxu2 %v1007_v35 }
  0x2c   :  { %312 = vmatpush.msrb.mxu3 %v1007_v35 }
  0x2d   :  { %333 = vmatpush.msra.mxu1 %v948_v23 }
  0x2f   :  { %334 = vmatpush.msra.mxu1 %v953_v24 }
  0x31   :  { %335 = vmatpush.msra.mxu1 %v961_v26 }
  0x33   :  { %336 = vmatpush.msra.mxu1 %v974_v28 }
  0x35   :  { %337 = vmatpush.msra.mxu1 %v981_v29 }
  0x37   :  { %338 = vmatpush.msra.mxu1 %v986_v30 }
  0x39   :  { %339 = vmatpush.msra.mxu1 %v994_v32 }
  0x3b   :  { %340 = vmatpush.msra.mxu1 %v1007_v35 }
  0x5e   :  { %v37_v34 = vpop.permute.xlu2 %36 }
  0x5f   :  { %vm51_vm5 = vcmp.eq.s32.totalorder %v937_v17, %v37_v34 }
  0x60   :  { %v769_v36 = vsel %vm51_vm5, 1.0, %v875_v19 }
  0x66   :  { %v40_v37 = vpop.permute.xlu2 %39 }
  0x67   :  { %vm52_vm6 = vcmp.eq.s32.totalorder %v937_v17, %v40_v37 }
  0x68   :  { %v770_v38 = vsel %vm52_vm6, 1.0, %v875_v19 }
  0x74   :  { %v25_v18 = vpop.permute.xlu0 %24  ;;  %v31_v25 = vpop.permute.xlu1 %30 }
  0x75   :  { %vm47_vm1 = vcmp.eq.s32.totalorder %v937_v17, %v25_v18  ;;  %vm49_vm3 = vcmp.eq.s32.totalorder %v937_v17, %v31_v25  ;;  %v406_v18 = vld [vmem:[%s1331_s1 + $0x60] sm:$0xff] }
  0x76   :  { %v765_v20 = vsel %vm47_vm1, 1.0, %v875_v19  ;;  %v767_v27 = vsel %vm49_vm3, 1.0, %v875_v19 }
  0x77   :  { %773 = vmatmul.msk.f32.vlgmr.msra.gmra.mxu0 %vm78_vm0, %v765_v20  ;;  %v405_v20 = vld [vmem:[%s1331_s1 + $0x58] sm:$0xff] }
  0x7c   :  { %v28_v21 = vpop.permute.xlu0 %27  ;;  %v34_v31 = vpop.permute.xlu1 %33 }
  0x7d   :  { %vm48_vm2 = vcmp.eq.s32.totalorder %v937_v17, %v28_v21  ;;  %vm50_vm4 = vcmp.eq.s32.totalorder %v937_v17, %v34_v31  ;;  %v404_v21 = vld [vmem:[%s1331_s1 + $0x50] sm:$0xff] }
  0x7e   :  { %v766_v22 = vsel %vm48_vm2, 1.0, %v875_v19  ;;  %v768_v33 = vsel %vm50_vm4, 1.0, %v875_v19 }
  0x7f   :  { %774 = vmatmul.msk.f32.gmra.mxu0 %vm78_vm0, %v766_v22  ;;  %v403_v22 = vld [vmem:[%s1331_s1 + $0x48] sm:$0xff] }
  0x84   :  { %v43_v39 = vpop.permute.xlu0 %42  ;;  %v46_v41 = vpop.permute.xlu1 %45 }
  0x85   :  { %vm53_vm7 = vcmp.eq.s32.totalorder %v937_v17, %v43_v39  ;;  %vm54_vm8 = vcmp.eq.s32.totalorder %v937_v17, %v46_v41  ;;  %v1157_v39 = vld [vmem:[%s1331_s1 + $0xe8] sm:$0xff] }
  0x86   :  { %v771_v40 = vsel %vm53_vm7, 1.0, %v875_v19  ;;  %v772_v42 = vsel %vm54_vm8, 1.0, %v875_v19 }
  0x87   :  { %775 = vmatmul.msk.f32.gmra.mxu0 %vm78_vm0, %v767_v27 }
  0x8f   :  { %776 = vmatmul.msk.f32.gmra.mxu0 %vm78_vm0, %v768_v33 }
  0x97   :  { %777 = vmatmul.msk.f32.gmra.mxu0 %vm78_vm0, %v769_v36 }
  0x99   :  { %v174_v56 = vpop.f32.mrf.mxu1 }
  0x9f   :  { %778 = vmatmul.msk.f32.gmra.mxu0 %vm78_vm0, %v770_v38  ;;  %v1152_v38 = vld [vmem:[%s1331_s1 + $0xf0] sm:$0xff] }
  0xa0   :  { %545 = vmatpush.msrb.mxu0 %v1152_v38 }
  0xa2   :  { %546 = vmatpush.msrb.mxu0 %v1157_v39 }
  0xa7   :  { %779 = vmatmul.msk.f32.gmra.mxu0 %vm78_vm0, %v771_v40  ;;  %v1164_v40 = vld [vmem:[%s1331_s1 + $0xe0] sm:$0xff] }
  0xa8   :  { %547 = vmatpush.msrb.mxu0 %v1164_v40 }
  0xaf   :  { %780 = vmatmul.msk.f32.gmra.mxu0 %vm78_vm0, %v772_v42 }
  0xf4   :  { %v1060_v43 = vpop.f32.mrf.mxu0 }
  0xfc   :  { %v123_v44 = vpop.f32.mrf.mxu0 }
 0x104   :  { %v126_v45 = vpop.f32.mrf.mxu0 }
 0x10c   :  { %v129_v46 = vpop.f32.mrf.mxu0 }
 0x114   :  { %v132_v47 = vpop.f32.mrf.mxu0 }
 0x115   :  { %v237_v48 = vsel %vm14_vm9, %v129_v46, %v132_v47  ;;  %v265_v49 = vsel %vm14_vm9, %v132_v47, %v129_v46  ;;  %v1190_v46 = vld [vmem:[%s1331_s1 + $0xc8] sm:$0xff]  ;;  %v1198_v47 = vld [vmem:[%s1331_s1 + $0xc0] sm:$0xff] }
 0x11c   :  { %v135_v50 = vpop.f32.mrf.mxu0 }
 0x11d   :  { %v209_v51 = vsel %vm14_vm9, %v126_v45, %v135_v50  ;;  %v293_v52 = vsel %vm14_vm9, %v135_v50, %v126_v45  ;;  %v1185_v45 = vld [vmem:[%s1331_s1 + $0xd0] sm:$0xff] }
 0x124   :  { %v138_v53 = vpop.f32.mrf.mxu0 }
 0x125   :  { %v181_v54 = vsel %vm14_vm9, %v123_v44, %v138_v53  ;;  %v321_v55 = vsel %vm14_vm9, %v138_v53, %v123_v44  ;;  %v1178_v44 = vld [vmem:[%s1331_s1 + $0xd8] sm:$0xff] }
 0x126   :  { %548 = vmatpush.msrb.mxu0 %v1178_v44 }
 0x128   :  { %549 = vmatpush.msrb.mxu0 %v1185_v45 }
 0x12a   :  { %550 = vmatpush.msrb.mxu0 %v1190_v46 }
 0x12c   :  { %v1075_v57 = vpop.f32.mrf.mxu0  ;;  %551 = vmatpush.msrb.mxu0 %v1198_v47 }
 0x12d   :  { %v152_v58 = vsel %vm14_vm9, %v1060_v43, %v1075_v57  ;;  %v349_v25 = vsel %vm14_vm9, %v1075_v57, %v1060_v43 }
 0x12e   :  { %v177_v59 = vadd.f32 %v174_v56, %v152_v58 }
 0x130   :  { %812 = vtanh.f32 %v177_v59 }
 0x136   :  { %v813_v60 = vpop.eup %812 }
 0x137   :  { %179 = vst.msk [vmem:[#allocation2] sm:$0xff] %vm153_vm10, %v813_v60  ;;  %781 = vmatmul.msk.f32.vlgmr.msra.gmra.mxu2 %vm153_vm10, %v813_v60 }
 0x138   :  { %180 = vst.msk [vmem:[#allocation3 + $0x38] sm:$0xff] %vm153_vm10, %v813_v60  ;;  %361 = vmatpush.msra.mxu2 %v948_v23  ;;  %v402_v23 = vld [vmem:[%s1331_s1 + $0x40] sm:$0xff] }
 0x13a   :  { %362 = vmatpush.msra.mxu2 %v953_v24  ;;  %v401_v24 = vld [vmem:[%s1331_s1 + $0x38] sm:$0xff] }
 0x13c   :  { %363 = vmatpush.msra.mxu2 %v961_v26 }
 0x13e   :  { %364 = vmatpush.msra.mxu2 %v974_v28 }
 0x13f   :  { %v392_v58 = vld [vmem:[#allocation3 + $0x38] sm:$0xff] }
 0x140   :  { %365 = vmatpush.msra.mxu2 %v981_v29  ;;  %v377_v29 = vld [vmem:[#allocation2] sm:$0xff] }
 0x142   :  { %366 = vmatpush.msra.mxu2 %v986_v30 }
 0x144   :  { %367 = vmatpush.msra.mxu2 %v994_v32 }
 0x146   :  { %368 = vmatpush.msra.mxu2 %v1007_v35 }
 0x1ba   :  { %v202_v61 = vpop.f32.mrf.mxu2 }
 0x1bb   :  { %v205_v62 = vadd.f32 %v202_v61, %v181_v54  ;;  %v810_v61 = vld [vmem:[%s1331_s1 + $0xf8] ss:$0 sm:$0xff] }
 0x1bd   :  { %814 = vtanh.f32 %v205_v62 }
 0x1c3   :  { %v815_v63 = vpop.eup %814 }
 0x1c4   :  { %207 = vst.msk [vmem:[#allocation2 + $0x8] sm:$0xff] %vm153_vm10, %v815_v63  ;;  %782 = vmatmul.msk.f32.vlgmr.msra.gmra.mxu3 %vm153_vm10, %v815_v63 }
 0x1c5   :  { %208 = vst.msk [vmem:[#allocation3 + $0x30] sm:$0xff] %vm153_vm10, %v815_v63  ;;  %443 = vmatpush.msra.mxu3 %v408_v15 }
 0x1c7   :  { %444 = vmatpush.msra.mxu3 %v407_v16 }
 0x1c9   :  { %445 = vmatpush.msra.mxu3 %v406_v18 }
 0x1cb   :  { %446 = vmatpush.msra.mxu3 %v405_v20  ;;  %v378_v33 = vld [vmem:[#allocation2 + $0x8] sm:$0xff] }
 0x1cd   :  { %447 = vmatpush.msra.mxu3 %v404_v21 }
 0x1cf   :  { %448 = vmatpush.msra.mxu3 %v403_v22 }
 0x1d1   :  { %449 = vmatpush.msra.mxu3 %v402_v23 }
 0x1d3   :  { %450 = vmatpush.msra.mxu3 %v401_v24 }
 0x247   :  { %v230_v0 = vpop.f32.mrf.mxu3 }
 0x248   :  { %v233_v1 = vadd.f32 %v230_v0, %v209_v51 }
 0x24a   :  { %816 = vtanh.f32 %v233_v1 }
 0x250   :  { %v817_v2 = vpop.eup %816 }
 0x251   :  { %235 = vst.msk [vmem:[#allocation2 + $0x10] sm:$0xff] %vm153_vm10, %v817_v2  ;;  %783 = vmatmul.msk.f32.vlgmr.msrb.gmra.mxu1 %vm153_vm10, %v817_v2 }
 0x252   :  { %236 = vst.msk [vmem:[#allocation3 + $0x28] sm:$0xff] %vm153_vm10, %v817_v2  ;;  %493 = vmatpush.msrb.mxu1 %v1152_v38 }
 0x254   :  { %494 = vmatpush.msrb.mxu1 %v1157_v39 }
 0x256   :  { %495 = vmatpush.msrb.mxu1 %v1164_v40 }
 0x258   :  { %v379_v36 = vld [vmem:[#allocation2 + $0x10] sm:$0xff]  ;;  %496 = vmatpush.msrb.mxu1 %v1178_v44 }
 0x259   :  { %v390_v53 = vld [vmem:[#allocation3 + $0x28] sm:$0xff] }
 0x25a   :  { %497 = vmatpush.msrb.mxu1 %v1185_v45 }
 0x25c   :  { %498 = vmatpush.msrb.mxu1 %v1190_v46 }
 0x25e   :  { %499 = vmatpush.msrb.mxu1 %v1198_v47 }
 0x2ce   :  { %v258_v3 = vpop.f32.mrf.mxu1 }
 0x2cf   :  { %v261_v4 = vadd.f32 %v258_v3, %v237_v48 }
 0x2d1   :  { %818 = vtanh.f32 %v261_v4 }
 0x2d7   :  { %v819_v5 = vpop.eup %818 }
 0x2d8   :  { %263 = vst.msk [vmem:[#allocation2 + $0x18] sm:$0xff] %vm153_vm10, %v819_v5  ;;  %784 = vmatmul.msk.f32.vlgmr.msrb.gmra.mxu2 %vm153_vm10, %v819_v5 }
 0x2d9   :  { %264 = vst.msk [vmem:[#allocation3 + $0x20] sm:$0xff] %vm153_vm10, %v819_v5  ;;  %519 = vmatpush.msrb.mxu2 %v1152_v38 }
 0x2db   :  { %520 = vmatpush.msrb.mxu2 %v1157_v39 }
 0x2dd   :  { %521 = vmatpush.msrb.mxu2 %v1164_v40 }
 0x2df   :  { %v380_v42 = vld [vmem:[#allocation2 + $0x18] sm:$0xff]  ;;  %522 = vmatpush.msrb.mxu2 %v1178_v44 }
 0x2e0   :  { %v389_v50 = vld [vmem:[#allocation3 + $0x20] sm:$0xff] }
 0x2e1   :  { %523 = vmatpush.msrb.mxu2 %v1185_v45 }
 0x2e3   :  { %524 = vmatpush.msrb.mxu2 %v1190_v46 }
 0x2e5   :  { %525 = vmatpush.msrb.mxu2 %v1198_v47 }
 0x35b   :  { %v286_v6 = vpop.f32.mrf.mxu2 }
 0x35c   :  { %v289_v7 = vadd.f32 %v286_v6, %v265_v49  ;;  %v1206_v49 = vld [vmem:[%s1331_s1 + $0xb8] sm:$0xff] }
 0x35d   :  { %500 = vmatpush.msrb.mxu1 %v1206_v49  ;;  %526 = vmatpush.msrb.mxu2 %v1206_v49 }
 0x35e   :  { %820 = vtanh.f32 %v289_v7  ;;  %552 = vmatpush.msrb.mxu0 %v1206_v49 }
 0x360   :  { %623 = vmatpush.msra.mxu0 %v1152_v38 }
 0x362   :  { %624 = vmatpush.msra.mxu0 %v1157_v39 }
 0x364   :  { %v821_v8 = vpop.eup %820  ;;  %625 = vmatpush.msra.mxu0 %v1164_v40 }
 0x365   :  { %291 = vst.msk [vmem:[#allocation2 + $0x20] sm:$0xff] %vm153_vm10, %v821_v8  ;;  %785 = vmatmul.msk.f32.vlgmr.msrb.gmra.mxu3 %vm153_vm10, %v821_v8 }
 0x366   :  { %292 = vst.msk [vmem:[#allocation3 + $0x18] sm:$0xff] %vm153_vm10, %v821_v8  ;;  %626 = vmatpush.msra.mxu0 %v1178_v44 }
 0x368   :  { %627 = vmatpush.msra.mxu0 %v1185_v45 }
 0x36a   :  { %628 = vmatpush.msra.mxu0 %v1190_v46 }
 0x36c   :  { %v381_v48 = vld [vmem:[#allocation2 + $0x20] sm:$0xff]  ;;  %629 = vmatpush.msra.mxu0 %v1198_v47 }
 0x36d   :  { %v388_v41 = vld [vmem:[#allocation3 + $0x18] sm:$0xff]  ;;  %v397_v51 = vsel %vm14_vm9, %v381_v48, %v389_v50  ;;  %v691_v50 = vld [vmem:[%s1331_s1 + $0x108] sm:$0xff] }
 0x36e   :  { %v396_v43 = vsel %vm14_vm9, %v380_v42, %v388_v41  ;;  %630 = vmatpush.msra.mxu0 %v1206_v49  ;;  %v697_v41 = vld [vmem:[%s1331_s1 + $0x138] sm:$0xff]  ;;  %v696_v42 = vld [vmem:[%s1331_s1 + $0x130] sm:$0xff] }
 0x36f   :  { %v693_v48 = vld [vmem:[%s1331_s1 + $0x118] sm:$0xff] }
 0x3e8   :  { %v314_v9 = vpop.f32.mrf.mxu3 }
 0x3e9   :  { %v317_v10 = vadd.f32 %v314_v9, %v293_v52 }
 0x3eb   :  { %822 = vtanh.f32 %v317_v10 }
 0x3f1   :  { %v823_v11 = vpop.eup %822 }
 0x3f2   :  { %319 = vst.msk [vmem:[#allocation2 + $0x28] sm:$0xff] %vm153_vm10, %v823_v11  ;;  %786 = vmatmul.msk.f32.vlgmr.msra.gmra.mxu1 %vm153_vm10, %v823_v11 }
 0x3f3   :  { %320 = vst.msk [vmem:[#allocation3 + $0x10] sm:$0xff] %vm153_vm10, %v823_v11  ;;  %571 = vmatpush.msra.mxu1 %v1152_v38 }
 0x3f5   :  { %572 = vmatpush.msra.mxu1 %v1157_v39 }
 0x3f7   :  { %573 = vmatpush.msra.mxu1 %v1164_v40 }
 0x3f9   :  { %v382_v52 = vld [vmem:[#allocation2 + $0x28] sm:$0xff]  ;;  %574 = vmatpush.msra.mxu1 %v1178_v44 }
 0x3fa   :  { %v387_v35 = vld [vmem:[#allocation3 + $0x10] sm:$0xff]  ;;  %501 = vmatmul.f32.vlgmr.msrb.gmra.mxu1 %v875_v19  ;;  %v398_v19 = vsel %vm14_vm9, %v382_v52, %v390_v53 }
 0x3fb   :  { %v395_v37 = vsel %vm14_vm9, %v379_v36, %v387_v35  ;;  %575 = vmatpush.msra.mxu1 %v1185_v45 }
 0x3fd   :  { %576 = vmatpush.msra.mxu1 %v1190_v46 }
 0x3ff   :  { %577 = vmatpush.msra.mxu1 %v1198_v47 }
 0x401   :  { %578 = vmatpush.msra.mxu1 %v1206_v49 }
 0x403   :  { %649 = vmatpush.msrb.mxu1 %v1152_v38 }
 0x405   :  { %650 = vmatpush.msrb.mxu1 %v1157_v39 }
 0x407   :  { %651 = vmatpush.msrb.mxu1 %v1164_v40 }
 0x409   :  { %652 = vmatpush.msrb.mxu1 %v1178_v44 }
 0x40b   :  { %653 = vmatpush.msrb.mxu1 %v1185_v45 }
 0x40d   :  { %654 = vmatpush.msrb.mxu1 %v1190_v46 }
 0x40f   :  { %655 = vmatpush.msrb.mxu1 %v1198_v47 }
 0x411   :  { %656 = vmatpush.msrb.mxu1 %v1206_v49 }
 0x46f   :  { %v342_v12 = vpop.f32.mrf.mxu1 }
 0x470   :  { %v345_v13 = vadd.f32 %v342_v12, %v321_v55  ;;  %v391_v55 = vld [vmem:[#allocation3 + $0x30] sm:$0xff] }
 0x472   :  { %824 = vtanh.f32 %v345_v13 }
 0x477   :  { %v502_v21 = vpop.f32.mrf.mxu1 }
 0x478   :  { %v825_v14 = vpop.eup %824 }
 0x479   :  { %347 = vst.msk [vmem:[#allocation2 + $0x30] sm:$0xff] %vm153_vm10, %v825_v14  ;;  %787 = vmatmul.msk.f32.vlgmr.msra.gmra.mxu2 %vm153_vm10, %v825_v14 }
 0x47a   :  { %348 = vst.msk [vmem:[#allocation3 + $0x8] sm:$0xff] %vm153_vm10, %v825_v14  ;;  %597 = vmatpush.msra.mxu2 %v1152_v38 }
 0x47c   :  { %598 = vmatpush.msra.mxu2 %v1157_v39 }
 0x47e   :  { %599 = vmatpush.msra.mxu2 %v1164_v40 }
 0x480   :  { %600 = vmatpush.msra.mxu2 %v1178_v44  ;;  %v383_v54 = vld [vmem:[#allocation2 + $0x30] sm:$0xff] }
 0x481   :  { %v386_v32 = vld [vmem:[#allocation3 + $0x8] sm:$0xff]  ;;  %v399_v56 = vsel %vm14_vm9, %v383_v54, %v391_v55  ;;  %v811_v55 = vld [vmem:[%s1331_s1 + $0x140] ss:$0 sm:$0xff] }
 0x482   :  { %v394_v34 = vsel %vm14_vm9, %v378_v33, %v386_v32  ;;  %601 = vmatpush.msra.mxu2 %v1185_v45 }
 0x484   :  { %602 = vmatpush.msra.mxu2 %v1190_v46 }
 0x486   :  { %603 = vmatpush.msra.mxu2 %v1198_v47 }
 0x488   :  { %604 = vmatpush.msra.mxu2 %v1206_v49 }
 0x4fc   :  { %v370_v26 = vpop.f32.mrf.mxu2 }
 0x4fd   :  { %v373_v27 = vadd.f32 %v370_v26, %v349_v25 }
 0x4ff   :  { %826 = vtanh.f32 %v373_v27 }
 0x505   :  { %v827_v28 = vpop.eup %826 }
 0x506   :  { %375 = vst.msk [vmem:[#allocation2 + $0x38] sm:$0xff] %vm153_vm10, %v827_v28 }
 0x507   :  { %376 = vst.msk [vmem:[#allocation3] sm:$0xff] %vm153_vm10, %v827_v28 }
 0x50d   :  { %v384_v57 = vld [vmem:[#allocation2 + $0x38] sm:$0xff] }
 0x50e   :  { %v385_v30 = vld [vmem:[#allocation3] sm:$0xff]  ;;  %v400_v59 = vsel %vm14_vm9, %v384_v57, %v392_v58 }
 0x50f   :  { %v393_v31 = vsel %vm14_vm9, %v377_v29, %v385_v30 }
 0x510   :  { %788 = vmatmul.msk.f32.vlgmr.msra.gmra.mxu3 %vm153_vm10, %v393_v31 }
 0x518   :  { %789 = vmatmul.msk.f32.gmra.mxu3 %vm153_vm10, %v394_v34 }
 0x520   :  { %790 = vmatmul.msk.f32.gmra.mxu3 %vm153_vm10, %v395_v37 }
 0x528   :  { %791 = vmatmul.msk.f32.gmra.mxu3 %vm153_vm10, %v396_v43 }
 0x530   :  { %792 = vmatmul.msk.f32.gmra.mxu3 %vm153_vm10, %v397_v51  ;;  %v690_v51 = vld [vmem:[%s1331_s1 + $0x100] sm:$0xff] }
 0x538   :  { %793 = vmatmul.msk.f32.gmra.mxu3 %vm153_vm10, %v398_v19 }
 0x540   :  { %794 = vmatmul.msk.f32.gmra.mxu3 %vm153_vm10, %v399_v56 }
 0x548   :  { %795 = vmatmul.msk.f32.gmra.mxu3 %vm153_vm10, %v400_v59 }
 0x593   :  { %v452_v60 = vpop.f32.mrf.mxu3 }
 0x594   :  { %v453_v18 = vadd.f32 %v810_v61, %v452_v60 }
 0x59b   :  { %v455_v62 = vpop.f32.mrf.mxu3 }
 0x59c   :  { %v456_v63 = vadd.f32 %v810_v61, %v455_v62 }
 0x5a3   :  { %v458_v0 = vpop.f32.mrf.mxu3 }
 0x5a4   :  { %v459_v1 = vadd.f32 %v810_v61, %v458_v0 }
 0x5ab   :  { %v461_v2 = vpop.f32.mrf.mxu3 }
 0x5ac   :  { %v462_v3 = vadd.f32 %v810_v61, %v461_v2 }
 0x5b3   :  { %v464_v4 = vpop.f32.mrf.mxu3 }
 0x5b4   :  { %v465_v5 = vadd.f32 %v810_v61, %v464_v4 }
 0x5b6   :  { %v559_v6 = vsel %vm14_vm9, %v462_v3, %v465_v5  ;;  %v585_v7 = vsel %vm14_vm9, %v465_v5, %v462_v3 }
 0x5bb   :  { %v467_v8 = vpop.f32.mrf.mxu3 }
 0x5bc   :  { %v468_v9 = vadd.f32 %v810_v61, %v467_v8 }
 0x5be   :  { %v533_v10 = vsel %vm14_vm9, %v459_v1, %v468_v9  ;;  %v611_v11 = vsel %vm14_vm9, %v468_v9, %v459_v1 }
 0x5c3   :  { %v470_v12 = vpop.f32.mrf.mxu3 }
 0x5c4   :  { %v471_v13 = vadd.f32 %v810_v61, %v470_v12 }
 0x5c6   :  { %v507_v14 = vsel %vm14_vm9, %v456_v63, %v471_v13  ;;  %v637_v15 = vsel %vm14_vm9, %v471_v13, %v456_v63 }
 0x5cb   :  { %v473_v16 = vpop.f32.mrf.mxu3 }
 0x5cc   :  { %v474_v20 = vadd.f32 %v810_v61, %v473_v16 }
 0x5ce   :  { %v484_v22 = vsel %vm14_vm9, %v453_v18, %v474_v20  ;;  %v663_v23 = vsel %vm14_vm9, %v474_v20, %v453_v18 }
 0x5cf   :  { %v505_v24 = vadd.f32 %v502_v21, %v484_v22 }
 0x5d1   :  { %828 = vtanh.f32 %v505_v24 }
 0x5d7   :  { %v829_v25 = vpop.eup %828 }
 0x5d8   :  { %796 = vmatmul.msk.f32.vlgmr.msrb.gmra.mxu2 %vm153_vm10, %v829_v25 }
 0x5d9   :  { %675 = vmatpush.msrb.mxu2 %v1152_v38 }
 0x5db   :  { %676 = vmatpush.msrb.mxu2 %v1157_v39 }
 0x5dd   :  { %677 = vmatpush.msrb.mxu2 %v1164_v40 }
 0x5df   :  { %678 = vmatpush.msrb.mxu2 %v1178_v44 }
 0x5e1   :  { %679 = vmatpush.msrb.mxu2 %v1185_v45 }
 0x5e3   :  { %680 = vmatpush.msrb.mxu2 %v1190_v46  ;;  %v695_v46 = vld [vmem:[%s1331_s1 + $0x128] sm:$0xff] }
 0x5e5   :  { %681 = vmatpush.msrb.mxu2 %v1198_v47  ;;  %v694_v47 = vld [vmem:[%s1331_s1 + $0x120] sm:$0xff] }
 0x5e7   :  { %682 = vmatpush.msrb.mxu2 %v1206_v49  ;;  %v692_v49 = vld [vmem:[%s1331_s1 + $0x110] sm:$0xff]  ;;  %s876_s1 = smov [#allocation4]  }
 0x5e8   :  { %s754_s20 = sshll.u32 %s876_s1, 4  ;;  %s755_s20 = int_to_ptr.vmem [resolvable:$true] %s754_s20 }
 0x65b   :  { %v528_v26 = vpop.f32.mrf.mxu2 }
 0x65c   :  { %v531_v27 = vadd.f32 %v528_v26, %v507_v14 }
 0x65e   :  { %830 = vtanh.f32 %v531_v27 }
 0x664   :  { %v831_v28 = vpop.eup %830 }
 0x665   :  { %797 = vmatmul.msk.f32.vlgmr.msrb.gmra.mxu0 %vm153_vm10, %v831_v28 }
 0x666   :  { %711 = vmatpush.msrb.mxu0 %v697_v41 }
 0x668   :  { %712 = vmatpush.msrb.mxu0 %v696_v42 }
 0x66a   :  { %713 = vmatpush.msrb.mxu0 %v695_v46 }
 0x66c   :  { %714 = vmatpush.msrb.mxu0 %v694_v47 }
 0x66e   :  { %715 = vmatpush.msrb.mxu0 %v693_v48 }
 0x670   :  { %716 = vmatpush.msrb.mxu0 %v692_v49 }
 0x672   :  { %717 = vmatpush.msrb.mxu0 %v691_v50 }
 0x674   :  { %718 = vmatpush.msrb.mxu0 %v690_v51 }
 0x6e2   :  { %v554_v29 = vpop.f32.mrf.mxu0 }
 0x6e3   :  { %v557_v30 = vadd.f32 %v554_v29, %v533_v10 }
 0x6e5   :  { %832 = vtanh.f32 %v557_v30 }
 0x6eb   :  { %v833_v31 = vpop.eup %832 }
 0x6ec   :  { %798 = vmatmul.msk.f32.vlgmr.msra.gmra.mxu1 %vm153_vm10, %v833_v31 }
 0x769   :  { %v580_v32 = vpop.f32.mrf.mxu1 }
 0x76a   :  { %v583_v33 = vadd.f32 %v580_v32, %v559_v6 }
 0x76c   :  { %834 = vtanh.f32 %v583_v33 }
 0x772   :  { %v835_v34 = vpop.eup %834 }
 0x773   :  { %799 = vmatmul.msk.f32.vlgmr.msra.gmra.mxu2 %vm153_vm10, %v835_v34 }
 0x7f6   :  { %v606_v35 = vpop.f32.mrf.mxu2 }
 0x7f7   :  { %v609_v36 = vadd.f32 %v606_v35, %v585_v7 }
 0x7f9   :  { %836 = vtanh.f32 %v609_v36 }
 0x7ff   :  { %v837_v37 = vpop.eup %836 }
 0x800   :  { %800 = vmatmul.msk.f32.vlgmr.msra.gmra.mxu0 %vm153_vm10, %v837_v37 }
 0x87d   :  { %v632_v38 = vpop.f32.mrf.mxu0 }
 0x87e   :  { %v635_v39 = vadd.f32 %v632_v38, %v611_v11 }
 0x880   :  { %838 = vtanh.f32 %v635_v39 }
 0x886   :  { %v839_v40 = vpop.eup %838 }
 0x887   :  { %801 = vmatmul.msk.f32.vlgmr.msrb.gmra.mxu1 %vm153_vm10, %v839_v40 }
 0x904   :  { %v658_v43 = vpop.f32.mrf.mxu1 }
 0x905   :  { %v661_v44 = vadd.f32 %v658_v43, %v637_v15 }
 0x907   :  { %840 = vtanh.f32 %v661_v44 }
 0x90d   :  { %v841_v45 = vpop.eup %840 }
 0x90e   :  { %802 = vmatmul.msk.f32.vlgmr.msrb.gmra.mxu2 %vm153_vm10, %v841_v45 }
 0x991   :  { %v684_v52 = vpop.f32.mrf.mxu2 }
 0x992   :  { %v687_v53 = vadd.f32 %v684_v52, %v663_v23 }
 0x994   :  { %842 = vtanh.f32 %v687_v53 }
 0x99a   :  { %v843_v19 = vpop.eup %842 }
 0x99b   :  { %v689_v54 = vsel %vm14_vm9, %v843_v19, %v829_v25 }
 0x99c   :  { %803 = vmatmul.msk.f32.vlgmr.msrb.gmra.mxu0 %vm153_vm10, %v689_v54 }
 0xa19   :  { %v720_v56 = vpop.f32.mrf.mxu0 }
 0xa1a   :  { %v721_v57 = vadd.f32 %v811_v55, %v720_v56 }
 0xa1c   :  { %v723_v58 = vsel %vm153_vm10, %v721_v57, -inf }
 0xa1d   :  { %724 = vmax.xlane.f32.xlu2 %v723_v58 }
 0xa90   :  { %v725_v59 = vpop.xlane.xlu2 %724 }
 0xa91   :  { %v726_v60 = vsub.f32 %v721_v57, %v725_v59 }
 0xa93   :  { %v727_v61 = vmul.f32 1.442695, %v726_v60 }
 0xa95   :  { %844 = vpow2.f32 %v727_v61 }
 0xa9b   :  { %v845_v62 = vpop.eup %844 }
 0xa9c   :  { %v729_v63 = vsel %vm153_vm10, %v845_v62, 0.0 }
 0xa9d   :  { %730 = vadd.xlane.f32.xlu0 %v729_v63 }
 0xb10   :  { %v731_v17 = vpop.xlane.xlu0 %730 }
 0xb11   :  { %846 = vrcp.f32 %v731_v17  ;;  %v743_v3 = vand.u32 2147483648, %v731_v17  ;;  %v741_v5 = vand.u32 2147483647, %v731_v17  ;;  %vm737_vm12 = vweird.f32 %v731_v17 }
 0xb13   :  { %v744_v7 = vor.u32 1.1754944e-38, %v743_v3  ;;  %vm742_vm14 = vcmp.eq.f32.partialorder %v741_v5, 8.507059e+37 }
 0xb17   :  { %v847_v0 = vpop.eup %846 }
 0xb18   :  { %v733_v1 = vmul.f32 %v847_v0, %v731_v17  ;;  %vm738_vm11 = vweird.f32 %v847_v0 }
 0xb19   :  { %vm739_vm13 = vmor %vm737_vm12, %vm738_vm11 }
 0xb1a   :  { %v734_v2 = vsub.f32 1.0, %v733_v1 }
 0xb1c   :  { %v735_v4 = vmul.f32 %v847_v0, %v734_v2 }
 0xb1e   :  { %v736_v6 = vadd.f32 %v847_v0, %v735_v4 }
 0xb20   :  { %v740_v8 = vsel %vm739_vm13, %v847_v0, %v736_v6 }
 0xb21   :  { %v745_v9 = vsel %vm742_vm14, %v744_v7, %v740_v8 }
 0xb22   :  { %v746_v10 = vmul.f32 %v845_v62, %v745_v9 }
 0xb24   :  { %748 = vst.msk [vmem:[#allocation4] sm:$0x3] %vm747_vm15, %v746_v10 }
 0xb25   :  { %759 = dma.vmem_to_hbm [thread:$0]  %s755_s20, 32, %s757_s23, [#allocation5]  }
 0xb26   :  { %872 = dma.done.wait [#allocation5], 32  }
 0xb27   :  { %873 = vsyncadd [#allocation5], 4294967264 }
 0xb28   :  { %764 = vsyncpa [#allocation5], 1 }

</bundles_post_ra>
